<compile_context>
chip_gen: v6e
topology: v6e:2x2x1
jax: 0.10.0
libtpu: 0.0.40
codegen_flags: <defaults>
</compile_context>

<pallas_src>
import jax
import jax.numpy as jnp
from jax.experimental import pallas as pl
from jax.experimental.pallas import tpu as pltpu


# ------------------------- kernels -------------------------

def _log_weighted(L):
    # == nan_to_num(log1p(L)/L, nan=1) * L   for all finite L > -1 (incl. L == 0).
    return jnp.where(L <= -1.0, L, jnp.log1p(L))


def _lbtw_weight(L, L0):
    # == nan_to_num(L / l0, nan=1) given l0 > 0 (guaranteed by LBTW.pre_weigh):
    # only the NaN patch is reachable, so the +/-inf clamps are dropped.
    ratio = L / L0
    return jnp.where(jnp.isnan(ratio), jnp.float32(1.0), ratio)


def _loss_transformer_kernel(l_ref, l0_ref, o_ref):
    L = l_ref[...]
    o_ref[...] = _lbtw_weight(L, l0_ref[...]) * _log_weighted(L)


def _loss_transformer_kernel_weighted(l_ref, l0_ref, w_ref, o_ref):
    L = l_ref[...]
    o_ref[...] = w_ref[...] * (_lbtw_weight(L, l0_ref[...]) * _log_weighted(L))


# ------------------------- wrapper -------------------------

def my_loss_transformer(losses, l0, weights=None):
    """
    losses : (N,) float32 — the N scalar losses (already stacked)
    l0     : (N,) float32 — LBTW reference losses (stateful buffer; strictly > 0)
    weights: optional (N,) — extra fixed multipliers (like the `weights=` arg)
    returns: (N,) float32 — transformed losses
    """
    n = losses.shape[0]
    vmem = pl.BlockSpec(memory_space=pltpu.MemorySpace.VMEM)

    args = [
        losses.reshape(1, n).astype(jnp.float32),
        l0.reshape(1, n).astype(jnp.float32),
    ]
    kernel = _loss_transformer_kernel
    if weights is not None:
        args.append(jnp.asarray(weights, jnp.float32).reshape(1, n))
        kernel = _loss_transformer_kernel_weighted

    out = pl.pallas_call(
        kernel,
        out_shape=jax.ShapeDtypeStruct((1, n), jnp.float32),
        in_specs=[vmem] * len(args),
        out_specs=vmem,
        cost_estimate=pl.CostEstimate(
            flops=20 * n, transcendentals=n, bytes_accessed=16 * n),
    )(*args)
    return out.reshape(n)


# ------------------------- pure-JAX reference (exact torch semantics) -------------------------

def _nan_to_num(x, nan_val):
    """Replicates torch.nan_to_num(x, nan=nan_val) for float32 (incl. inf clamps)."""
    big = jnp.finfo(x.dtype).max
    small = jnp.finfo(x.dtype).min
    x = jnp.where(jnp.isnan(x), jnp.asarray(nan_val, x.dtype), x)
    x = jnp.where(x == jnp.inf, big, x)
    x = jnp.where(x == -jnp.inf, small, x)
    return x


def _reference(losses, l0, weights=None):
    """MyLossTransformer.forward (default config) in plain JAX, torch-faithful."""
    L = losses.astype(jnp.float32)
    L0 = l0.astype(jnp.float32)
    w_lbtw = _nan_to_num(L / L0, 1.0)
    w_log = _nan_to_num(jnp.log1p(L) / L, 1.0)
    out = w_lbtw * (w_log * L)
    if weights is not None:
        out = jnp.asarray(weights, jnp.float32) * out
    return out


# ------------------------- demo / self-check -------------------------

if __name__ == "__main__":
    N = 8  # number of losses
    key = jax.random.PRNGKey(0)
    k_l, k_l0 = jax.random.split(key)

    # Current losses; include a zero to exercise the (0/0 -> 1) LogWeighter patch.
    losses = jax.random.uniform(k_l, (N,), jnp.float32, 0.0, 3.0)
    losses = losses.at[3].set(0.0)

    # Deterministic init of the LBTW state buffer l0 (would be set by
    # LBTW.pre_weigh in PyTorch); strictly positive, so no division by zero.
    l0 = jax.random.uniform(k_l0, (N,), jnp.float32, 0.5, 2.0)

    # Default path (weights=None) — 2 separate VMEM inputs.
    out = jax.block_until_ready(my_loss_transformer(losses, l0))
    ref = _reference(losses, l0)
    assert out.shape == (N,)
    assert jnp.allclose(out, ref, atol=1e-5, rtol=1e-5), (out, ref)

    # Weighted path — 3 separate VMEM inputs.
    w = jnp.array([1.0, 0.5, 2.0, 1.0, 0.25, 1.5, 1.0, 3.0], jnp.float32)
    out_w = jax.block_until_ready(my_loss_transformer(losses, l0, weights=w))
    ref_w = _reference(losses, l0, w)
    assert jnp.allclose(out_w, ref_w, atol=1e-5, rtol=1e-5), (out_w, ref_w)

    # TODO(synk): MetaBalance (meta=True) branch carries a stateful EMA update
    # with in-place masked writes; not exercised here since default meta=False.
    print("KERNEL_OK")
</pallas_src>

<mosaic_0001>
module attributes {stable_mosaic.version = 11 : i64} {
  func.func @_loss_transformer_kernel(%arg0: memref<1x8xf32, #tpu.memory_space<vmem>>, %arg1: memref<1x8xf32, #tpu.memory_space<vmem>>, %arg2: memref<1x8xf32, #tpu.memory_space<vmem>>) attributes {dimension_semantics = [], scalar_prefetch = 0 : i64, scratch_operands = 0 : i64, tpu.core_type = #tpu.core_type<tc>} {
    %c0 = arith.constant 0 : index
    %c0_0 = arith.constant 0 : index
    %0 = vector.load %arg0[%c0, %c0_0] : memref<1x8xf32, #tpu.memory_space<vmem>>, vector<1x8xf32>
    %c0_1 = arith.constant 0 : index
    %c0_2 = arith.constant 0 : index
    %1 = vector.load %arg1[%c0_1, %c0_2] : memref<1x8xf32, #tpu.memory_space<vmem>>, vector<1x8xf32>
    %2 = arith.divf %0, %1 : vector<1x8xf32>
    %3 = arith.cmpf one, %2, %2 : vector<1x8xf32>
    %cst = arith.constant 1.000000e+00 : f32
    %4 = vector.broadcast %cst : f32 to vector<1x8xf32>
    %5 = arith.select %3, %4, %2 : vector<1x8xi1>, vector<1x8xf32>
    %cst_3 = arith.constant -1.000000e+00 : f32
    %6 = vector.broadcast %cst_3 : f32 to vector<1x8xf32>
    %7 = arith.cmpf ole, %0, %6 : vector<1x8xf32>
    %8 = math.log1p %0 : vector<1x8xf32>
    %9 = arith.select %7, %0, %8 : vector<1x8xi1>, vector<1x8xf32>
    %10 = arith.mulf %5, %9 : vector<1x8xf32>
    %c0_4 = arith.constant 0 : index
    %c0_5 = arith.constant 0 : index
    %11 = vector.load %arg2[%c0_4, %c0_5] : memref<1x8xf32, #tpu.memory_space<vmem>>, vector<1x8xf32>
    tpu.vector_store %arg2[%c0_4, %c0_5], %10 {strides = array<i32>} : memref<1x8xf32, #tpu.memory_space<vmem>>, vector<1x8xf32>,
    return
  }
}

</mosaic_0001>

<bundles_post_ra>
// kernel: tpu_custom_call.1
= control target key start
LH: loop header
LB: loop body
LE: loop exit
PB: predicated region body
PF: predicated region fallthrough
CT: control target
= control target key end

     0   :  { %7 = vsyncpa [#allocation3], 0  ;;  %s135_s0 = inlined_call_operand.hbm [shape: f32[1,8], index: 0, kind: input, shape index: {}]   ;;  %s136_s1 = inlined_call_operand.vmem [shape: f32[1,8], index: 1, kind: input, shape index: {}]   ;;  %s137_s2 = inlined_call_operand.hbm [shape: f32[1,8], index: 2, kind: output, shape index: {}]  }
   0x1   :  { %8 = vsyncpa [#allocation4], 0  ;;  %s109_s9 = smov [#allocation2]  }
   0x2   :  { %s15_s10 = sshll.u32 %s109_s9, 4  ;;  %s16_s10 = int_to_ptr.vmem [resolvable:$true] %s15_s10 }
   0x3   :  { %s73_s11 = scalar_lea.vmem %s16_s10, 16  ;;  %s77_s12 = scalar_lea.vmem %s16_s10, 32 }
   0x4   :  { %p74_p0 = scmp.ne.s32.totalorder %s16_s10, %s73_s11  ;;  %p78_p1 = scmp.lt.s32.totalorder %s16_s10, %s16_s10 }
   0x5   :  { %p79_p2 = scmp.lt.s32.totalorder %s77_s12, %s73_s11 }
   0x7   :  { %p80_p3 = por %p79_p2, %p78_p1 }
   0x9   :  { %p81_p4 = pnand %p80_p3, %p74_p0 }
   0xb   :  { %84 = shalt.err (!%p81_p4)
}
   0xc   :  { %18 = dma.hbm_to_vmem [thread:$0]  %s135_s0, 16, %s16_s10, [#allocation3]  }
   0xd   :  { %105 = dma.done.wait [#allocation3], 16  }
   0xe   :  { %106 = vsyncadd [#allocation3], 4294967280  ;;  %v24_v0 = vld [vmem:[#allocation2] sm:$0x1]  ;;  %s110_s0 = smov [#allocation5]   ;;  %vm42_vm3 = vcmask 57344  }
   0xf   :  { %v25_v1 = vld [vmem:[%s136_s1] sm:$0x1]  ;;  %v31_v2 = vadd.f32 1.0, %v24_v0  ;;  %v34_v3 = vmul.f32 -0.5, %v24_v0  ;;  %v37_v5 = vand.u32 2147483647, %v24_v0 }
  0x10   :  { %61 = vrcp.f32 %v25_v1  ;;  %vm30_vm2 = vcmp.le.f32.partialorder %v24_v0, -1.0  ;;  %s50_s17 = sshll.u32 %s110_s0, 4  ;;  %s51_s17 = int_to_ptr.vmem [resolvable:$true] %s50_s17 }
  0x11   :  { %63 = vlog2.f32 %v31_v2  ;;  %v35_v4 = vadd.f32 1.0, %v34_v3  ;;  %vm38_vm0 = vcmp.lt.f32.partialorder %v37_v5, 0.0004427343  ;;  %s85_s1 = scalar_lea.vmem %s51_s17, 16  ;;  %s89_s18 = scalar_lea.vmem %s51_s17, 32 }
  0x12   :  { %p86_p5 = scmp.ne.s32.totalorder %s51_s17, %s85_s1  ;;  %p90_p6 = scmp.lt.s32.totalorder %s51_s17, %s51_s17 }
  0x13   :  { %v36_v8 = vmul.f32 %v35_v4, %v24_v0  ;;  %p91_p7 = scmp.lt.s32.totalorder %s89_s18, %s85_s1 }
  0x15   :  { %p92_p8 = por %p91_p7, %p90_p6 }
  0x17   :  { %p93_p9 = pnand %p92_p8, %p86_p5 }
  0x1d   :  { %v62_v6 = vpop.eup %61 }
  0x1e   :  { %v27_v7 = vmul.f32 %v62_v6, %v24_v0  ;;  %v64_v9 = vpop.eup %63 }
  0x1f   :  { %v33_v10 = vmul.f32 0.6931472, %v64_v9 }
  0x20   :  { %vm28_vm1 = vcmp.ne.f32.partialorder %v27_v7, %v27_v7 }
  0x21   :  { %v29_v11 = vsel %vm28_vm1, 1.0, %v27_v7  ;;  %v39_v12 = vsel %vm38_vm0, %v36_v8, %v33_v10 }
  0x22   :  { %v40_v13 = vsel %vm30_vm2, %v24_v0, %v39_v12 }
  0x23   :  { %v41_v14 = vmul.f32 %v40_v13, %v29_v11 }
  0x25   :  { %43 = vst.msk [vmem:[#allocation5] sm:$0x1] %vm42_vm3, %v41_v14 }
  0x26   :  { %96 = shalt.err (!%p93_p9)
}
  0x27   :  { %53 = dma.vmem_to_hbm [thread:$0]  %s51_s17, 16, %s137_s2, [#allocation4]  }
  0x28   :  { %107 = dma.done.wait [#allocation4], 16  }
  0x29   :  { %108 = vsyncadd [#allocation4], 4294967280 }
  0x2a   :  { %57 = vsyncpa [#allocation3], 1 }
  0x2b   :  { %58 = vsyncpa [#allocation4], 1 }

</bundles_post_ra>
